<compile_context>
chip_gen: v6e
topology: v6e:2x2x1
jax: 0.10.0
libtpu: 0.0.40
codegen_flags: <defaults>
</compile_context>

<pallas_src>
import math
import jax
import jax.numpy as jnp
from jax import lax
from jax.experimental import pallas as pl
from jax.experimental.pallas import tpu as pltpu

EPS = 1e-5  # PyTorch LayerNorm default eps


# ----------------------------------------------------------------------------
# Pallas kernel: the full decoder. Grid = (n_layer,), layer axis is a
# sequential carry ("arbitrary"); x lives in a VMEM scratch across layers.
# ----------------------------------------------------------------------------
def decoder_layers_kernel(x_ref, scale_ref, shift_ref, wp_ref, bp_ref,
                          w1_ref, b1_ref, w2_ref, b2_ref, lnw_ref, lnb_ref,
                          o_ref, x_carry):
    l = pl.program_id(0)
    n_layers = pl.num_programs(0)

    B = scale_ref.shape[1]        # batch (static)
    S = wp_ref.shape[1]           # n_channel (static)

    @pl.when(l == 0)
    def _init():
        x_carry[...] = x_ref[...].astype(jnp.float32)

    x = x_carry[...]                                     # (B*S, D) f32

    # --- AdaLayerNorm: no-affine LN over D, then x*(1+scale)+shift ----------
    mu = jnp.mean(x, axis=-1, keepdims=True)
    var = jnp.mean(jnp.square(x - mu), axis=-1, keepdims=True)
    xn = (x - mu) * lax.rsqrt(var + EPS)                 # (B*S, D)

    scale = scale_ref[0]                                 # (B, D)
    shift = shift_ref[0]                                 # (B, D)
    wp = wp_ref[0]                                       # (S, S)  (out, in)
    bp = bp_ref[0]                                       # (S, D)  pre-broadcast bias

    # Apply per-batch scale/shift and the channel projection (Wp @ x_b) per
    # batch block. B is a Python int -> fully unrolled at trace time.
    xa_parts = []
    h_parts = []
    for b in range(B):
        xb = xn[b * S:(b + 1) * S, :]                    # (S, D)
        xab = xb * (1.0 + scale[b:b + 1, :]) + shift[b:b + 1, :]
        xa_parts.append(xab)
        h_parts.append(
            jnp.dot(wp, xab, preferred_element_type=jnp.float32) + bp)
    residual = jnp.concatenate(xa_parts, axis=0)         # (B*S, D)
    h = jnp.maximum(jnp.concatenate(h_parts, axis=0), 0.0)  # ReLU; Dropout=id

    # --- MLP: D -> 4D (SiLU) -> D, batch+channels folded into rows ----------
    m = jnp.dot(h, w1_ref[0], preferred_element_type=jnp.float32) + b1_ref[0]
    m = m * jax.nn.sigmoid(m)                            # SiLU; Dropout=id
    m = jnp.dot(m, w2_ref[0], preferred_element_type=jnp.float32) + b2_ref[0]

    # --- residual + affine LayerNorm -----------------------------------------
    y = m + residual
    mu2 = jnp.mean(y, axis=-1, keepdims=True)
    var2 = jnp.mean(jnp.square(y - mu2), axis=-1, keepdims=True)
    out = (y - mu2) * lax.rsqrt(var2 + EPS) * lnw_ref[0] + lnb_ref[0]

    x_carry[...] = out                                   # carry to next layer

    @pl.when(l == n_layers - 1)
    def _write():
        o_ref[...] = out.astype(o_ref.dtype)


# ----------------------------------------------------------------------------
# Plain-JAX glue: sinusoidal timestep embedding (tiny, depends only on t).
# ----------------------------------------------------------------------------
def sinusoidal_pos_emb(t, dim):
    half = dim // 2
    emb_scale = math.log(10000.0) / (half - 1)
    freqs = jnp.exp(jnp.arange(half, dtype=jnp.float32) * -emb_scale)
    emb = t.astype(jnp.float32)[:, None] * freqs[None, :]
    return jnp.concatenate([jnp.sin(emb), jnp.cos(emb)], axis=-1)  # (B, dim)


# ----------------------------------------------------------------------------
# Decoder forward (single fused Pallas call over all layers).
# ----------------------------------------------------------------------------
def decoder_forward_pallas(x, t, params, label_emb=None):
    B, S, D = x.shape
    H = 4 * D
    L = params["wp"].shape[0]
    R = B * S

    # AdaLN conditioning for every layer in one batched einsum (t-only).
    emb = sinusoidal_pos_emb(t, D)                       # (B, D)
    if label_emb is not None:
        emb = emb + label_emb
    e = emb * jax.nn.sigmoid(emb)                        # SiLU
    ada = jnp.einsum("bd,lde->lbe", e, params["w_ada"]) + params["b_ada"][:, None, :]
    scale = ada[..., :D]                                 # (L, B, D)
    shift = ada[..., D:]                                 # (L, B, D)

    # Layout plumbing (all in the jitted wrapper, outside the kernel).
    x2 = x.reshape(R, D)                                 # one flat row slab
    bp = jnp.broadcast_to(params["bp"][:, :, None], (L, S, D))
    b1 = params["b1"].reshape(L, 1, H)
    b2 = params["b2"].reshape(L, 1, D)
    lnw = params["lnw"].reshape(L, 1, D)
    lnb = params["lnb"].reshape(L, 1, D)

    per_layer = lambda l: (l, 0, 0)
    whole = lambda l: (0, 0)

    in_specs = [
        pl.BlockSpec((R, D), whole),          # x        (loaded once, resident)
        pl.BlockSpec((1, B, D), per_layer),   # scale_l
        pl.BlockSpec((1, B, D), per_layer),   # shift_l
        pl.BlockSpec((1, S, S), per_layer),   # Wp_l     (out, in)
        pl.BlockSpec((1, S, D), per_layer),   # bp_l     (pre-broadcast over D)
        pl.BlockSpec((1, D, H), per_layer),   # W1_l
        pl.BlockSpec((1, 1, H), per_layer),   # b1_l
        pl.BlockSpec((1, H, D), per_layer),   # W2_l
        pl.BlockSpec((1, 1, D), per_layer),   # b2_l
        pl.BlockSpec((1, 1, D), per_layer),   # lnw_l
        pl.BlockSpec((1, 1, D), per_layer),   # lnb_l
    ]
    out_specs = pl.BlockSpec((R, D), whole)   # written back once, at the end

    flops = 2 * L * B * (S * S * D + 2 * S * D * H)
    transcendentals = L * R * (H + 2)
    bytes_accessed = 4 * (2 * R * D
                          + L * (2 * B * D + S * S + S * D + 2 * D * H + H + 3 * D))

    out2 = pl.pallas_call(
        decoder_layers_kernel,
        out_shape=jax.ShapeDtypeStruct((R, D), x.dtype),
        grid=(L,),
        in_specs=in_specs,
        out_specs=out_specs,
        scratch_shapes=[pltpu.VMEM((R, D), jnp.float32)],
        compiler_params=pltpu.CompilerParams(
            dimension_semantics=("arbitrary",)),    # layer axis is a carry
        cost_estimate=pl.CostEstimate(flops=flops,
                                      transcendentals=transcendentals,
                                      bytes_accessed=bytes_accessed),
    )(x2, scale, shift, params["wp"], bp, params["w1"], b1,
      params["w2"], b2, lnw, lnb)
    return out2.reshape(B, S, D)


# ----------------------------------------------------------------------------
# Parameter init (deterministic, nn.Linear-style uniform init), stacked per
# layer with a leading L dimension so the kernel can stream them.
# ----------------------------------------------------------------------------
def init_linear(key, fan_in, fan_out):
    k1, k2 = jax.random.split(key)
    bound = 1.0 / math.sqrt(fan_in)
    w = jax.random.uniform(k1, (fan_in, fan_out), jnp.float32, -bound, bound)
    b = jax.random.uniform(k2, (fan_out,), jnp.float32, -bound, bound)
    return w, b


def init_decoder_params(key, n_channel, n_embd, n_layer):
    S, D, H, L = n_channel, n_embd, 4 * n_embd, n_layer
    w_ada, b_ada, wp, bp, w1, b1, w2, b2 = ([] for _ in range(8))
    for _ in range(L):
        key, k_ada, k_p, k_1, k_2 = jax.random.split(key, 5)
        wa, ba = init_linear(k_ada, D, 2 * D)
        wpt, bpl = init_linear(k_p, S, S)
        w1l, b1l = init_linear(k_1, D, H)
        w2l, b2l = init_linear(k_2, H, D)
        w_ada.append(wa); b_ada.append(ba)
        wp.append(wpt.T)          # stored (out, in) so kernel computes Wp @ x
        bp.append(bpl)
        w1.append(w1l); b1.append(b1l); w2.append(w2l); b2.append(b2l)
    return dict(
        w_ada=jnp.stack(w_ada), b_ada=jnp.stack(b_ada),
        wp=jnp.stack(wp), bp=jnp.stack(bp),
        w1=jnp.stack(w1), b1=jnp.stack(b1),
        w2=jnp.stack(w2), b2=jnp.stack(b2),
        lnw=jnp.ones((L, D), jnp.float32),
        lnb=jnp.zeros((L, D), jnp.float32),
    )


# ----------------------------------------------------------------------------
# Pure-JAX reference (mirrors the PyTorch module).
# ----------------------------------------------------------------------------
def _layernorm(x, eps=EPS):
    mu = jnp.mean(x, axis=-1, keepdims=True)
    var = jnp.mean(jnp.square(x - mu), axis=-1, keepdims=True)
    return (x - mu) * lax.rsqrt(var + eps)


def decoder_forward_ref(x, t, params, label_emb=None):
    B, S, D = x.shape
    L = params["wp"].shape[0]
    emb = sinusoidal_pos_emb(t, D)
    if label_emb is not None:
        emb = emb + label_emb
    e = emb * jax.nn.sigmoid(emb)
    for l in range(L):
        ada = e @ params["w_ada"][l] + params["b_ada"][l]
        scale, shift = ada[:, :D], ada[:, D:]
        xa = _layernorm(x) * (1.0 + scale[:, None, :]) + shift[:, None, :]
        residual = xa
        h = jnp.maximum(
            jnp.einsum("os,bsd->bod", params["wp"][l], xa)
            + params["bp"][l][None, :, None], 0.0)
        m = h @ params["w1"][l] + params["b1"][l]
        m = m * jax.nn.sigmoid(m)
        m = m @ params["w2"][l] + params["b2"][l]
        x = _layernorm(m + residual) * params["lnw"][l] + params["lnb"][l]
    return x


if __name__ == "__main__":
    B, n_channel, n_embd, n_layer = 2, 8, 32, 3

    key = jax.random.PRNGKey(0)
    k_params, k_x, k_t = jax.random.split(key, 3)
    params = init_decoder_params(k_params, n_channel, n_embd, n_layer)

    x = jax.random.normal(k_x, (B, n_channel, n_embd), jnp.float32)
    t = jax.random.randint(k_t, (B,), 0, 100).astype(jnp.float32)

    fwd = jax.jit(decoder_forward_pallas)
    out = jax.block_until_ready(fwd(x, t, params))

    ref = decoder_forward_ref(x, t, params)
    assert out.shape == (B, n_channel, n_embd)
    max_err = float(jnp.max(jnp.abs(out - ref)))
    assert jnp.allclose(out, ref, atol=1e-4, rtol=1e-4), f"max abs err = {max_err}"

    print("KERNEL_OK")
</pallas_src>

<mosaic_0001>
module attributes {stable_mosaic.version = 11 : i64} {
  func.func @decoder_layers_kernel(%arg0: i32, %arg1: memref<16x32xf32, #tpu.memory_space<vmem>>, %arg2: memref<1x2x32xf32, #tpu.memory_space<vmem>>, %arg3: memref<1x2x32xf32, #tpu.memory_space<vmem>>, %arg4: memref<1x8x8xf32, #tpu.memory_space<vmem>>, %arg5: memref<1x8x32xf32, #tpu.memory_space<vmem>>, %arg6: memref<1x32x128xf32, #tpu.memory_space<vmem>>, %arg7: memref<1x1x128xf32, #tpu.memory_space<vmem>>, %arg8: memref<1x128x32xf32, #tpu.memory_space<vmem>>, %arg9: memref<1x1x32xf32, #tpu.memory_space<vmem>>, %arg10: memref<1x1x32xf32, #tpu.memory_space<vmem>>, %arg11: memref<1x1x32xf32, #tpu.memory_space<vmem>>, %arg12: memref<16x32xf32, #tpu.memory_space<vmem>>, %arg13: memref<16x32xf32, #tpu.memory_space<vmem>>) attributes {dimension_semantics = [#tpu.dimension_semantics<arbitrary>], iteration_bounds = array<i64: 3>, scalar_prefetch = 0 : i64, scratch_operands = 1 : i64, tpu.core_type = #tpu.core_type<tc>, window_params = [{pipeline_mode = #tpu.pipeline_mode<synchronous>, transform_indices = @transform_0, window_bounds = array<i64: 16, 32>}, {transform_indices = @transform_1, window_bounds = array<i64: 1, 2, 32>}, {transform_indices = @transform_2, window_bounds = array<i64: 1, 2, 32>}, {transform_indices = @transform_3, window_bounds = array<i64: 1, 8, 8>}, {transform_indices = @transform_4, window_bounds = array<i64: 1, 8, 32>}, {transform_indices = @transform_5, window_bounds = array<i64: 1, 32, 128>}, {transform_indices = @transform_6, window_bounds = array<i64: 1, 1, 128>}, {transform_indices = @transform_7, window_bounds = array<i64: 1, 128, 32>}, {transform_indices = @transform_8, window_bounds = array<i64: 1, 1, 32>}, {transform_indices = @transform_9, window_bounds = array<i64: 1, 1, 32>}, {transform_indices = @transform_10, window_bounds = array<i64: 1, 1, 32>}, {pipeline_mode = #tpu.pipeline_mode<synchronous>, transform_indices = @transform_11, window_bounds = array<i64: 16, 32>}]} {
    %c0_i32 = arith.constant 0 : i32
    %0 = arith.cmpi eq, %arg0, %c0_i32 : i32
    %1 = arith.extui %0 : i1 to i32
    %c0_i32_0 = arith.constant 0 : i32
    %2 = arith.cmpi ne, %1, %c0_i32_0 : i32
    scf.if %2 {
      %c0_52 = arith.constant 0 : index
      %c0_53 = arith.constant 0 : index
      %107 = vector.load %arg1[%c0_52, %c0_53] : memref<16x32xf32, #tpu.memory_space<vmem>>, vector<16x32xf32>
      %c0_54 = arith.constant 0 : index
      %c0_55 = arith.constant 0 : index
      %108 = vector.load %arg13[%c0_54, %c0_55] : memref<16x32xf32, #tpu.memory_space<vmem>>, vector<16x32xf32>
      tpu.vector_store %arg13[%c0_54, %c0_55], %107 {strides = array<i32>} : memref<16x32xf32, #tpu.memory_space<vmem>>, vector<16x32xf32>,
    } else {
    }
    %c0 = arith.constant 0 : index
    %c0_1 = arith.constant 0 : index
    %3 = vector.load %arg13[%c0, %c0_1] : memref<16x32xf32, #tpu.memory_space<vmem>>, vector<16x32xf32>
    %cst = arith.constant dense<0.000000e+00> : vector<16xf32>
    %4 = vector.multi_reduction <add>, %3, %cst [1] : vector<16x32xf32> to vector<16xf32>
    %5 = vector.shape_cast %4 : vector<16xf32> to vector<16x1xf32>
    %cst_2 = arith.constant 3.200000e+01 : f32
    %6 = vector.broadcast %cst_2 : f32 to vector<16x1xf32>
    %7 = arith.divf %5, %6 : vector<16x1xf32>
    %8 = vector.broadcast %7 : vector<16x1xf32> to vector<16x32xf32>
    %9 = arith.subf %3, %8 : vector<16x32xf32>
    %10 = arith.mulf %9, %9 : vector<16x32xf32>
    %cst_3 = arith.constant dense<0.000000e+00> : vector<16xf32>
    %11 = vector.multi_reduction <add>, %10, %cst_3 [1] : vector<16x32xf32> to vector<16xf32>
    %12 = vector.shape_cast %11 : vector<16xf32> to vector<16x1xf32>
    %cst_4 = arith.constant 3.200000e+01 : f32
    %13 = vector.broadcast %cst_4 : f32 to vector<16x1xf32>
    %14 = arith.divf %12, %13 : vector<16x1xf32>
    %15 = vector.broadcast %7 : vector<16x1xf32> to vector<16x32xf32>
    %16 = arith.subf %3, %15 : vector<16x32xf32>
    %cst_5 = arith.constant 9.99999974E-6 : f32
    %17 = vector.broadcast %cst_5 : f32 to vector<16x1xf32>
    %18 = arith.addf %14, %17 : vector<16x1xf32>
    %19 = math.rsqrt %18 : vector<16x1xf32>
    %20 = vector.broadcast %19 : vector<16x1xf32> to vector<16x32xf32>
    %21 = arith.mulf %16, %20 : vector<16x32xf32>
    %c0_6 = arith.constant 0 : index
    %c0_7 = arith.constant 0 : index
    %c0_8 = arith.constant 0 : index
    %22 = vector.load %arg2[%c0_6, %c0_7, %c0_8] : memref<1x2x32xf32, #tpu.memory_space<vmem>>, vector<1x2x32xf32>
    %23 = vector.shape_cast %22 : vector<1x2x32xf32> to vector<2x32xf32>
    %c0_9 = arith.constant 0 : index
    %c0_10 = arith.constant 0 : index
    %c0_11 = arith.constant 0 : index
    %24 = vector.load %arg3[%c0_9, %c0_10, %c0_11] : memref<1x2x32xf32, #tpu.memory_space<vmem>>, vector<1x2x32xf32>
    %25 = vector.shape_cast %24 : vector<1x2x32xf32> to vector<2x32xf32>
    %c0_12 = arith.constant 0 : index
    %c0_13 = arith.constant 0 : index
    %c0_14 = arith.constant 0 : index
    %26 = vector.load %arg4[%c0_12, %c0_13, %c0_14] : memref<1x8x8xf32, #tpu.memory_space<vmem>>, vector<1x8x8xf32>
    %27 = vector.shape_cast %26 : vector<1x8x8xf32> to vector<8x8xf32>
    %c0_15 = arith.constant 0 : index
    %c0_16 = arith.constant 0 : index
    %c0_17 = arith.constant 0 : index
    %28 = vector.load %arg5[%c0_15, %c0_16, %c0_17] : memref<1x8x32xf32, #tpu.memory_space<vmem>>, vector<1x8x32xf32>
    %29 = vector.shape_cast %28 : vector<1x8x32xf32> to vector<8x32xf32>
    %30 = vector.extract_strided_slice %21 {offsets = [0, 0], sizes = [8, 32], strides = [1, 1]} : vector<16x32xf32> to vector<8x32xf32>
    %31 = vector.extract_strided_slice %23 {offsets = [0, 0], sizes = [1, 32], strides = [1, 1]} : vector<2x32xf32> to vector<1x32xf32>
    %cst_18 = arith.constant 1.000000e+00 : f32
    %32 = vector.broadcast %cst_18 : f32 to vector<1x32xf32>
    %33 = arith.addf %32, %31 : vector<1x32xf32>
    %34 = vector.broadcast %33 : vector<1x32xf32> to vector<8x32xf32>
    %35 = arith.mulf %30, %34 : vector<8x32xf32>
    %36 = vector.extract_strided_slice %25 {offsets = [0, 0], sizes = [1, 32], strides = [1, 1]} : vector<2x32xf32> to vector<1x32xf32>
    %37 = vector.broadcast %36 : vector<1x32xf32> to vector<8x32xf32>
    %38 = arith.addf %35, %37 : vector<8x32xf32>
    %cst_19 = arith.constant dense<0.000000e+00> : vector<8x32xf32>
    %39 = tpu.matmul %27, %38, %cst_19 {dimension_numbers = #tpu.dot_dimension_numbers<[1], [0], [0], [1], [0, 0, 1, 1], [], []>} : vector<8x8xf32>, vector<8x32xf32>, vector<8x32xf32> -> vector<8x32xf32>
    %40 = arith.addf %39, %29 : vector<8x32xf32>
    %41 = vector.extract_strided_slice %21 {offsets = [8, 0], sizes = [8, 32], strides = [1, 1]} : vector<16x32xf32> to vector<8x32xf32>
    %42 = vector.extract_strided_slice %23 {offsets = [1, 0], sizes = [1, 32], strides = [1, 1]} : vector<2x32xf32> to vector<1x32xf32>
    %cst_20 = arith.constant 1.000000e+00 : f32
    %43 = vector.broadcast %cst_20 : f32 to vector<1x32xf32>
    %44 = arith.addf %43, %42 : vector<1x32xf32>
    %45 = vector.broadcast %44 : vector<1x32xf32> to vector<8x32xf32>
    %46 = arith.mulf %41, %45 : vector<8x32xf32>
    %47 = vector.extract_strided_slice %25 {offsets = [1, 0], sizes = [1, 32], strides = [1, 1]} : vector<2x32xf32> to vector<1x32xf32>
    %48 = vector.broadcast %47 : vector<1x32xf32> to vector<8x32xf32>
    %49 = arith.addf %46, %48 : vector<8x32xf32>
    %cst_21 = arith.constant dense<0.000000e+00> : vector<8x32xf32>
    %50 = tpu.matmul %27, %49, %cst_21 {dimension_numbers = #tpu.dot_dimension_numbers<[1], [0], [0], [1], [0, 0, 1, 1], [], []>} : vector<8x8xf32>, vector<8x32xf32>, vector<8x32xf32> -> vector<8x32xf32>
    %51 = arith.addf %50, %29 : vector<8x32xf32>
    %52 = tpu.concatenate %38, %49 in 0 : vector<8x32xf32>, vector<8x32xf32> -> vector<16x32xf32>
    %53 = tpu.concatenate %40, %51 in 0 : vector<8x32xf32>, vector<8x32xf32> -> vector<16x32xf32>
    %cst_22 = arith.constant 0.000000e+00 : f32
    %54 = vector.broadcast %cst_22 : f32 to vector<16x32xf32>
    %55 = arith.maximumf %53, %54 : vector<16x32xf32>
    %c0_23 = arith.constant 0 : index
    %c0_24 = arith.constant 0 : index
    %c0_25 = arith.constant 0 : index
    %56 = vector.load %arg6[%c0_23, %c0_24, %c0_25] : memref<1x32x128xf32, #tpu.memory_space<vmem>>, vector<1x32x128xf32>
    %57 = vector.shape_cast %56 : vector<1x32x128xf32> to vector<32x128xf32>
    %cst_26 = arith.constant dense<0.000000e+00> : vector<16x128xf32>
    %58 = tpu.matmul %55, %57, %cst_26 {dimension_numbers = #tpu.dot_dimension_numbers<[1], [0], [0], [1], [0, 0, 1, 1], [], []>} : vector<16x32xf32>, vector<32x128xf32>, vector<16x128xf32> -> vector<16x128xf32>
    %c0_27 = arith.constant 0 : index
    %c0_28 = arith.constant 0 : index
    %c0_29 = arith.constant 0 : index
    %59 = vector.load %arg7[%c0_27, %c0_28, %c0_29] : memref<1x1x128xf32, #tpu.memory_space<vmem>>, vector<1x1x128xf32>
    %60 = vector.shape_cast %59 : vector<1x1x128xf32> to vector<1x128xf32>
    %61 = vector.broadcast %60 : vector<1x128xf32> to vector<16x128xf32>
    %62 = arith.addf %58, %61 : vector<16x128xf32>
    %63 = arith.negf %62 : vector<16x128xf32>
    %64 = math.exp %63 : vector<16x128xf32>
    %cst_30 = arith.constant 1.000000e+00 : f32
    %65 = vector.broadcast %cst_30 : f32 to vector<16x128xf32>
    %66 = arith.addf %65, %64 : vector<16x128xf32>
    %67 = arith.divf %65, %66 : vector<16x128xf32>
    %68 = arith.mulf %62, %67 : vector<16x128xf32>
    %c0_31 = arith.constant 0 : index
    %c0_32 = arith.constant 0 : index
    %c0_33 = arith.constant 0 : index
    %69 = vector.load %arg8[%c0_31, %c0_32, %c0_33] : memref<1x128x32xf32, #tpu.memory_space<vmem>>, vector<1x128x32xf32>
    %70 = vector.shape_cast %69 : vector<1x128x32xf32> to vector<128x32xf32>
    %cst_34 = arith.constant dense<0.000000e+00> : vector<16x32xf32>
    %71 = tpu.matmul %68, %70, %cst_34 {dimension_numbers = #tpu.dot_dimension_numbers<[1], [0], [0], [1], [0, 0, 1, 1], [], []>} : vector<16x128xf32>, vector<128x32xf32>, vector<16x32xf32> -> vector<16x32xf32>
    %c0_35 = arith.constant 0 : index
    %c0_36 = arith.constant 0 : index
    %c0_37 = arith.constant 0 : index
    %72 = vector.load %arg9[%c0_35, %c0_36, %c0_37] : memref<1x1x32xf32, #tpu.memory_space<vmem>>, vector<1x1x32xf32>
    %73 = vector.shape_cast %72 : vector<1x1x32xf32> to vector<1x32xf32>
    %74 = vector.broadcast %73 : vector<1x32xf32> to vector<16x32xf32>
    %75 = arith.addf %71, %74 : vector<16x32xf32>
    %76 = arith.addf %75, %52 : vector<16x32xf32>
    %cst_38 = arith.constant dense<0.000000e+00> : vector<16xf32>
    %77 = vector.multi_reduction <add>, %76, %cst_38 [1] : vector<16x32xf32> to vector<16xf32>
    %78 = vector.shape_cast %77 : vector<16xf32> to vector<16x1xf32>
    %cst_39 = arith.constant 3.200000e+01 : f32
    %79 = vector.broadcast %cst_39 : f32 to vector<16x1xf32>
    %80 = arith.divf %78, %79 : vector<16x1xf32>
    %81 = vector.broadcast %80 : vector<16x1xf32> to vector<16x32xf32>
    %82 = arith.subf %76, %81 : vector<16x32xf32>
    %83 = arith.mulf %82, %82 : vector<16x32xf32>
    %cst_40 = arith.constant dense<0.000000e+00> : vector<16xf32>
    %84 = vector.multi_reduction <add>, %83, %cst_40 [1] : vector<16x32xf32> to vector<16xf32>
    %85 = vector.shape_cast %84 : vector<16xf32> to vector<16x1xf32>
    %cst_41 = arith.constant 3.200000e+01 : f32
    %86 = vector.broadcast %cst_41 : f32 to vector<16x1xf32>
    %87 = arith.divf %85, %86 : vector<16x1xf32>
    %88 = vector.broadcast %80 : vector<16x1xf32> to vector<16x32xf32>
    %89 = arith.subf %76, %88 : vector<16x32xf32>
    %cst_42 = arith.constant 9.99999974E-6 : f32
    %90 = vector.broadcast %cst_42 : f32 to vector<16x1xf32>
    %91 = arith.addf %87, %90 : vector<16x1xf32>
    %92 = math.rsqrt %91 : vector<16x1xf32>
    %93 = vector.broadcast %92 : vector<16x1xf32> to vector<16x32xf32>
    %94 = arith.mulf %89, %93 : vector<16x32xf32>
    %c0_43 = arith.constant 0 : index
    %c0_44 = arith.constant 0 : index
    %c0_45 = arith.constant 0 : index
    %95 = vector.load %arg10[%c0_43, %c0_44, %c0_45] : memref<1x1x32xf32, #tpu.memory_space<vmem>>, vector<1x1x32xf32>
    %96 = vector.shape_cast %95 : vector<1x1x32xf32> to vector<1x32xf32>
    %97 = vector.broadcast %96 : vector<1x32xf32> to vector<16x32xf32>
    %98 = arith.mulf %94, %97 : vector<16x32xf32>
    %c0_46 = arith.constant 0 : index
    %c0_47 = arith.constant 0 : index
    %c0_48 = arith.constant 0 : index
    %99 = vector.load %arg11[%c0_46, %c0_47, %c0_48] : memref<1x1x32xf32, #tpu.memory_space<vmem>>, vector<1x1x32xf32>
    %100 = vector.shape_cast %99 : vector<1x1x32xf32> to vector<1x32xf32>
    %101 = vector.broadcast %100 : vector<1x32xf32> to vector<16x32xf32>
    %102 = arith.addf %98, %101 : vector<16x32xf32>
    %c0_49 = arith.constant 0 : index
    %c0_50 = arith.constant 0 : index
    %103 = vector.load %arg13[%c0_49, %c0_50] : memref<16x32xf32, #tpu.memory_space<vmem>>, vector<16x32xf32>
    tpu.vector_store %arg13[%c0_49, %c0_50], %102 {strides = array<i32>} : memref<16x32xf32, #tpu.memory_space<vmem>>, vector<16x32xf32>,
    %c2_i32 = arith.constant 2 : i32
    %104 = arith.cmpi eq, %arg0, %c2_i32 : i32
    %105 = arith.extui %104 : i1 to i32
    %c0_i32_51 = arith.constant 0 : i32
    %106 = arith.cmpi ne, %105, %c0_i32_51 : i32
    scf.if %106 {
      %c0_52 = arith.constant 0 : index
      %c0_53 = arith.constant 0 : index
      %107 = vector.load %arg12[%c0_52, %c0_53] : memref<16x32xf32, #tpu.memory_space<vmem>>, vector<16x32xf32>
      tpu.vector_store %arg12[%c0_52, %c0_53], %102 {strides = array<i32>} : memref<16x32xf32, #tpu.memory_space<vmem>>, vector<16x32xf32>,
    } else {
    }
    return
  }
  func.func @transform_0(%arg0: i32) -> (i32, i32) {
    %c0_i32 = arith.constant 0 : i32
    %c0_i32_0 = arith.constant 0 : i32
    %c0_i32_1 = arith.constant 0 : i32
    return %c0_i32, %c0_i32_0 : i32, i32
  }
  func.func @transform_1(%arg0: i32) -> (i32, i32, i32) {
    %c0_i32 = arith.constant 0 : i32
    %c0_i32_0 = arith.constant 0 : i32
    %c0_i32_1 = arith.constant 0 : i32
    return %arg0, %c0_i32, %c0_i32_0 : i32, i32, i32
  }
  func.func @transform_2(%arg0: i32) -> (i32, i32, i32) {
    %c0_i32 = arith.constant 0 : i32
    %c0_i32_0 = arith.constant 0 : i32
    %c0_i32_1 = arith.constant 0 : i32
    return %arg0, %c0_i32, %c0_i32_0 : i32, i32, i32
  }
  func.func @transform_3(%arg0: i32) -> (i32, i32, i32) {
    %c0_i32 = arith.constant 0 : i32
    %c0_i32_0 = arith.constant 0 : i32
    %c0_i32_1 = arith.constant 0 : i32
    return %arg0, %c0_i32, %c0_i32_0 : i32, i32, i32
  }
  func.func @transform_4(%arg0: i32) -> (i32, i32, i32) {
    %c0_i32 = arith.constant 0 : i32
    %c0_i32_0 = arith.constant 0 : i32
    %c0_i32_1 = arith.constant 0 : i32
    return %arg0, %c0_i32, %c0_i32_0 : i32, i32, i32
  }
  func.func @transform_5(%arg0: i32) -> (i32, i32, i32) {
    %c0_i32 = arith.constant 0 : i32
    %c0_i32_0 = arith.constant 0 : i32
    %c0_i32_1 = arith.constant 0 : i32
    return %arg0, %c0_i32, %c0_i32_0 : i32, i32, i32
  }
  func.func @transform_6(%arg0: i32) -> (i32, i32, i32) {
    %c0_i32 = arith.constant 0 : i32
    %c0_i32_0 = arith.constant 0 : i32
    %c0_i32_1 = arith.constant 0 : i32
    return %arg0, %c0_i32, %c0_i32_0 : i32, i32, i32
  }
  func.func @transform_7(%arg0: i32) -> (i32, i32, i32) {
    %c0_i32 = arith.constant 0 : i32
    %c0_i32_0 = arith.constant 0 : i32
    %c0_i32_1 = arith.constant 0 : i32
    return %arg0, %c0_i32, %c0_i32_0 : i32, i32, i32
  }
  func.func @transform_8(%arg0: i32) -> (i32, i32, i32) {
    %c0_i32 = arith.constant 0 : i32
    %c0_i32_0 = arith.constant 0 : i32
    %c0_i32_1 = arith.constant 0 : i32
    return %arg0, %c0_i32, %c0_i32_0 : i32, i32, i32
  }
  func.func @transform_9(%arg0: i32) -> (i32, i32, i32) {
    %c0_i32 = arith.constant 0 : i32
    %c0_i32_0 = arith.constant 0 : i32
    %c0_i32_1 = arith.constant 0 : i32
    return %arg0, %c0_i32, %c0_i32_0 : i32, i32, i32
  }
  func.func @transform_10(%arg0: i32) -> (i32, i32, i32) {
    %c0_i32 = arith.constant 0 : i32
    %c0_i32_0 = arith.constant 0 : i32
    %c0_i32_1 = arith.constant 0 : i32
    return %arg0, %c0_i32, %c0_i32_0 : i32, i32, i32
  }
  func.func @transform_11(%arg0: i32) -> (i32, i32) {
    %c0_i32 = arith.constant 0 : i32
    %c0_i32_0 = arith.constant 0 : i32
    %c0_i32_1 = arith.constant 0 : i32
    return %c0_i32, %c0_i32_0 : i32, i32
  }
}

</mosaic_0001>

<bundles_post_ra>
// kernel: decoder_forward_pallas.1
= control target key start
LH: loop header
LB: loop body
LE: loop exit
PB: predicated region body
PF: predicated region fallthrough
CT: control target
= control target key end

     0   :  { %s1534_s0 = inlined_call_operand.vmem [shape: f32[16,32], index: 0, kind: input, shape index: {}]   ;;  %s1535_s1 = inlined_call_operand.vmem [shape: f32[3,2,32], index: 1, kind: input, shape index: {}]   ;;  %s1536_s2 = inlined_call_operand.vmem [shape: f32[3,2,32], index: 2, kind: input, shape index: {}]   ;;  %s1537_s3 = inlined_call_operand.vmem [shape: f32[3,8,8], index: 3, kind: input, shape index: {}]   ;;  %s1538_s4 = inlined_call_operand.vmem [shape: f32[3,8,32], index: 4, kind: input, shape index: {}]   ;;  %s1539_s5 = inlined_call_operand.vmem [shape: f32[3,32,128], index: 5, kind: input, shape index: {}]   ;;  %s1540_s6 = inlined_call_operand.vmem [shape: f32[3,1,128], index: 6, kind: input, shape index: {}]   ;;  %s1541_s7 = inlined_call_operand.vmem [shape: f32[3,128,32], index: 7, kind: input, shape index: {}]   ;;  %s1542_s8 = inlined_call_operand.vmem [shape: f32[3,1,32], index: 8, kind: input, shape index: {}]   ;;  %s1543_s9 = inlined_call_operand.vmem [shape: f32[3,1,32], index: 9, kind: input, shape index: {}]   ;;  %s1544_s10 = inlined_call_operand.vmem [shape: f32[3,1,32], index: 10, kind: input, shape index: {}]   ;;  %s1545_s11 = inlined_call_operand.hbm [shape: f32[16,32], index: 11, kind: output, shape index: {}]  }
   0x1   :  { %1547 = sst [smem:[#allocation7_spill]] %s1535_s1 }
   0x2   :  { %1548 = sst [smem:[#allocation8_spill]] %s1536_s2 }
   0x3   :  { %1549 = sst [smem:[#allocation9_spill]] %s1537_s3 }
   0x4   :  { %16 = vsyncpa [#allocation4], 0  ;;  %s1379_s17 = smov 0  }
   0x5 LB: > { %1550 = sst [smem:[#allocation6_spill]] %s1312_s17  ;;  %s1385_s18 = sadd.s32 4294967295, %s1312_s17   ;;  %s1312_s17 = sphi %s1379_s17, %s22_s17  }
   0x6   : > { %p1132_p0 = scmp.ge.s32.totalorder %s1312_s17, 1  ;;  %p411_p1 = scmp.lt.s32.totalorder %s1312_s17, 4 }
   0x8   : > { %p412_p2 = pnand %p1132_p0, %p411_p1 }
   0x9   : > { %p479_p3 = scmp.lt.s32.totalorder (!%p412_p2), %s1385_s18, 2  ;;  %s1551_s1 = sld [smem:[#allocation7_spill]] (!%p412_p2) }
   0xa   : > { %415 = sbr.rel (%p412_p2) target bundleno = 1304 (0x518), region = 64  ;;  %s1552_s2 = sld [smem:[#allocation8_spill]] (!%p412_p2) }
   0xb   : > { %s1553_s3 = sld [smem:[#allocation9_spill]] (!%p412_p2)  ;;  %p1141_p4 = scmp.ne.s32.totalorder (!%p412_p2), %s1385_s18, 0 }
   0xf   : > { %s1391_s19 = scalar_select %p479_p3, %s1385_s18, 2 }
  0x11   : > { %s1133_s20 = sshll.u32 %s1391_s19, 1  ;;  %s1135_s21 = sshll.u32 %s1391_s19, 3 }
  0x12   : > { %s1398_s24 = scalar_lea.vmem %s1551_s1, %s1133_s20  ;;  %s1403_s27 = scalar_lea.vmem %s1552_s2, %s1133_s20 }
  0x13   : > { %s1408_s30 = scalar_lea.vmem %s1553_s3, %s1135_s21  ;;  %s1413_s14 = scalar_lea.vmem %s1538_s4, %s1135_s21 }
  0x14   : > { %s1157_s15 = sshll.u32 %s1391_s19, 5  ;;  %s1158_s25 = sshll.u32 %s1391_s19, 7 }
  0x15   : > { %s1423_s20 = scalar_lea.vmem %s1539_s5, %s1157_s15  ;;  %s1429_s29 = scalar_lea.vmem %s1541_s7, %s1158_s25 }
  0x16   : > { %s510_s21 = scalar_lea.vmem %s1542_s8, %s1391_s19  ;;  %s513_s16 = scalar_lea.vmem %s1543_s9, %s1391_s19 }
  0x17   : > { %s516_s1 = scalar_lea.vmem %s1544_s10, %s1391_s19  ;;  %520 = sbr.rel (%p1141_p4) target bundleno = 30 (0x1e), region = 68 }
  0x1c   : > { %v521_v0 = vld [vmem:[%s1534_s0] sm:$0xff]  ;;  %vm523_vm0 = vcmask 261120   ;;  %v522_v1 = vld [vmem:[%s1534_s0 + $0x8] sm:$0xff] }
  0x1d   : > { %524 = vst.msk [vmem:[#allocation2] sm:$0xff] %vm523_vm0, %v521_v0  ;;  %525 = vst.msk [vmem:[#allocation2 + $0x8] sm:$0xff] %vm523_vm0, %v522_v1 }
  0x1e PF: > { %vm528_vm1 = vcmask 261120   ;;  %v1314_v16 = vmov 0.0   ;;  %vm1315_vm2 = vmmov 0   ;;  %v561_v22 = vlaneseq  ;;  %v556_v25 = vld [vmem:[%s1398_s24] sm:$0x3]  ;;  %v730_v43 = vld [vmem:[%s1423_s20 + $0x18] sm:$0xff]  ;;  %s1554_s24 = scalar_lea.vmem %s1540_s6, %s1391_s19 }
  0x1f   : > { %1187 = vmatprep.subr.mxu0 %v1314_v16  ;;  %1189 = vmatprep.mubr.msk.f32.mxu0 %vm1315_vm2, %v1314_v16  ;;  %v560_v26 = vadd.f32 1.0, %v556_v25  ;;  %v557_v28 = vld [vmem:[%s1403_s27] sm:$0x3]  ;;  %vm571_vm3 = vcmask 64512   ;;  %v729_v44 = vld [vmem:[%s1423_s20 + $0x10] sm:$0xff]  ;;  %v728_v45 = vld [vmem:[%s1423_s20 + $0x8] sm:$0xff] }
  0x20   : > { %v562_v24 = vshrl.u32 %v561_v22, 7  ;;  %v558_v39 = vld [vmem:[%s1408_s30] sm:$0xff]  ;;  %v848_v56 = vld [vmem:[%s1429_s29 + $0x78] sm:$0xff]  ;;  %v847_v57 = vld [vmem:[%s1429_s29 + $0x70] sm:$0xff]  ;;  %p1152_p5 = scmp.ne.s32.totalorder %s1385_s18, 2 }
  0x21   : > { %v727_v46 = vld [vmem:[%s1423_s20] sm:$0xff]  ;;  %1208 = vmatprep.subr.mxu1 %v848_v56  ;;  %v846_v58 = vld [vmem:[%s1429_s29 + $0x68] sm:$0xff]  ;;  %v844_v60 = vld [vmem:[%s1429_s29 + $0x58] sm:$0xff] }
  0x22   : > { %v563_v27 = vsub.s32 0, %v562_v24  ;;  %v647_v30 = vsub.s32 1, %v562_v24  ;;  %v559_v47 = vld [vmem:[%s1413_s14] sm:$0xff]  ;;  %1209 = vmatpush3.msra.mxu1 %v848_v56  ;;  %v843_v61 = vld [vmem:[%s1429_s29 + $0x50] sm:$0xff]  ;;  %v842_v62 = vld [vmem:[%s1429_s29 + $0x48] sm:$0xff] }
  0x23   : > { %1210 = vmatprep.subr.mxu1 %v847_v57  ;;  %v845_v59 = vld [vmem:[%s1429_s29 + $0x60] sm:$0xff]  ;;  %v840_v0 = vld [vmem:[%s1429_s29 + $0x38] sm:$0xff]  ;;  %v839_v1 = vld [vmem:[%s1429_s29 + $0x30] sm:$0xff] }
  0x24   : > { %v526_v2 = vld [vmem:[#allocation2] sm:$0xff]  ;;  %v527_v3 = vld [vmem:[#allocation2 + $0x8] sm:$0xff]  ;;  %v564_v29 = vrot.slane %v560_v26, %v563_v27  ;;  %v569_v33 = vrot.slane %v557_v28, %v563_v27  ;;  %v648_v35 = vrot.slane %v560_v26, %v647_v30  ;;  %v653_v38 = vrot.slane %v557_v28, %v647_v30  ;;  %1211 = vmatpush3.msra.mxu1 %v847_v57 }
  0x25   : > { %v529_v4 = vsel %vm528_vm1, %v526_v2, 0.0  ;;  %v532_v5 = vsel %vm528_vm1, %v527_v3, 0.0  ;;  %1212 = vmatprep.subr.mxu1 %v846_v58  ;;  %v841_v63 = vld [vmem:[%s1429_s29 + $0x40] sm:$0xff] }
  0x26   : > { %530 = vadd.xlane.f32.xlu0 %v529_v4  ;;  %1213 = vmatpush3.msra.mxu1 %v846_v58  ;;  %v836_v4 = vld [vmem:[%s1429_s29 + $0x18] sm:$0xff] }
  0x27   : > { %1214 = vmatprep.subr.mxu1 %v845_v59 }
  0x28   : > { %1215 = vmatpush3.msra.mxu1 %v845_v59 }
  0x29   : > { %1216 = vmatprep.subr.mxu1 %v844_v60 }
  0x2a   : > { %533 = vadd.xlane.f32.xlu0 %v532_v5  ;;  %1217 = vmatpush3.msra.mxu1 %v844_v60  ;;  %v835_v5 = vld [vmem:[%s1429_s29 + $0x10] sm:$0xff] }
  0x2b   : > { %1218 = vmatprep.subr.mxu1 %v843_v61 }
  0x2c   : > { %1219 = vmatpush3.msra.mxu1 %v843_v61 }
  0x2d   : > { %1220 = vmatprep.subr.mxu1 %v842_v62 }
  0x2e   : > { %1221 = vmatpush3.msra.mxu1 %v842_v62 }
  0x2f   : > { %1222 = vmatprep.subr.mxu1 %v841_v63 }
  0x30   : > { %1223 = vmatpush3.msra.mxu1 %v841_v63 }
  0x31   : > { %1224 = vmatprep.subr.mxu1 %v840_v0 }
  0x32   : > { %1225 = vmatpush3.msra.mxu1 %v840_v0 }
  0x33   : > { %1226 = vmatprep.subr.mxu1 %v839_v1 }
  0x34   : > { %1227 = vmatpush3.msra.mxu1 %v839_v1 }
  0xaf   : > { %v531_v6 = vpop.xlane.xlu0 %530 }
  0xb0   : > { %v536_v7 = vmul.f32 0.03125, %v531_v6  ;;  %v834_v6 = vld [vmem:[%s1429_s29 + $0x8] sm:$0xff] }
  0xb2   : > { %v538_v8 = vsub.f32 %v526_v2, %v536_v7  ;;  %v838_v2 = vld [vmem:[%s1429_s29 + $0x28] sm:$0xff]  ;;  %v833_v7 = vld [vmem:[%s1429_s29] sm:$0xff] }
  0xb3   : > { %v534_v9 = vpop.xlane.xlu0 %533  ;;  %1228 = vmatprep.subr.mxu1 %v838_v2 }
  0xb4   : > { %v537_v10 = vmul.f32 0.03125, %v534_v9  ;;  %v540_v11 = vmul.f32 %v538_v8, %v538_v8  ;;  %1229 = vmatpush3.msra.mxu1 %v838_v2 }
  0xb6   : > { %v539_v12 = vsub.f32 %v527_v3, %v537_v10  ;;  %v542_v13 = vsel %vm528_vm1, %v540_v11, 0.0  ;;  %v837_v3 = vld [vmem:[%s1429_s29 + $0x20] sm:$0xff] }
  0xb7   : > { %543 = vadd.xlane.f32.xlu1 %v542_v13  ;;  %1230 = vmatprep.subr.mxu1 %v837_v3 }
  0xb8   : > { %v541_v14 = vmul.f32 %v539_v12, %v539_v12  ;;  %1231 = vmatpush3.msra.mxu1 %v837_v3 }
  0xb9   : > { %1232 = vmatprep.subr.mxu1 %v836_v4 }
  0xba   : > { %v545_v15 = vsel %vm528_vm1, %v541_v14, 0.0  ;;  %1233 = vmatpush3.msra.mxu1 %v836_v4 }
  0xbb   : > { %546 = vadd.xlane.f32.xlu1 %v545_v15  ;;  %1234 = vmatprep.subr.mxu1 %v835_v5 }
  0xbc   : > { %1235 = vmatpush3.msra.mxu1 %v835_v5 }
  0xbd   : > { %1236 = vmatprep.subr.mxu1 %v834_v6 }
  0xbe   : > { %1237 = vmatpush3.msra.mxu1 %v834_v6 }
  0xbf   : > { %1238 = vmatprep.subr.mxu1 %v833_v7 }
  0xc0   : > { %1239 = vmatpush3.msra.mxu1 %v833_v7 }
 0x140   : > { %v544_v17 = vpop.xlane.xlu1 %543 }
 0x141   : > { %v548_v18 = vmul.f32 0.03125, %v544_v17 }
 0x143   : > { %v550_v19 = vadd.f32 1e-05, %v548_v18 }
 0x144   : > { %v547_v20 = vpop.xlane.xlu1 %546 }
 0x145   : > { %1262 = vrsqrt.f32 %v550_v19  ;;  %v549_v21 = vmul.f32 0.03125, %v547_v20 }
 0x147   : > { %v551_v23 = vadd.f32 1e-05, %v549_v21 }
 0x149   : > { %1264 = vrsqrt.f32 %v551_v23  ;;  %v1149_v23 = vld [vmem:[%s510_s21] ss:$0 sm:$0xff] }
 0x152   : > { %v1263_v31 = vpop.eup %1262 }
 0x153   : > { %v554_v32 = vmul.f32 %v1263_v31, %v538_v8  ;;  %v1144_v8 = vld [vmem:[%s1554_s24] ss:$0 sm:$0xff] }
 0x155   : > { %v565_v34 = vmul.f32 %v564_v29, %v554_v32 }
 0x156   : > { %v1265_v36 = vpop.eup %1264 }
 0x157   : > { %v1457_v37 = vadd.f32 %v569_v33, %v565_v34  ;;  %v555_v40 = vmul.f32 %v1265_v36, %v539_v12 }
 0x159   : > { %1188 = vmatpush3.msra.mxu0 %v1457_v37  ;;  %v649_v41 = vmul.f32 %v648_v35, %v555_v40 }
 0x15a   : > { %1190 = vmatmul.mubr.msk.f32.vlgmr.msra.gmra.mxu0 %vm571_vm3, %v558_v39  ;;  %1192 = vmatprep.subr.mxu0 %v1314_v16 }
 0x15b   : > { %v1461_v42 = vadd.f32 %v653_v38, %v649_v41  ;;  %1194 = vmatprep.mubr.msk.f32.mxu0 %vm1315_vm2, %v1314_v16 }
 0x15d   : > { %1193 = vmatpush3.msra.mxu0 %v1461_v42 }
 0x15e   : > { %1195 = vmatmul.mubr.msk.f32.vlgmr.msra.gmra.mxu0 %vm571_vm3, %v558_v39  ;;  %1197 = vmatprep.subr.mxu0 %v730_v43 }
 0x15f   : > { %1198 = vmatpush3.msra.mxu0 %v730_v43 }
 0x160   : > { %1199 = vmatprep.subr.mxu0 %v729_v44 }
 0x161   : > { %1200 = vmatpush3.msra.mxu0 %v729_v44 }
 0x162   : > { %1201 = vmatprep.subr.mxu0 %v728_v45 }
 0x163   : > { %1202 = vmatpush3.msra.mxu0 %v728_v45 }
 0x164   : > { %1203 = vmatprep.subr.mxu0 %v727_v46 }
 0x165   : > { %1204 = vmatpush3.msra.mxu0 %v727_v46 }
 0x21a   : > { %v641_v48 = vpop.f32.mrf.mxu0 }
 0x21b   : > { %v642_v49 = vadd.f32 %v641_v48, %v559_v47 }
 0x21c   : > { %v1191_v50 = vpop.f32.mrf.mxu0 }
 0x21d   : > { %v725_v51 = vmax.f32 %v642_v49, 0.0  ;;  %v1150_v49 = vld [vmem:[%s513_s16] ss:$0 sm:$0xff] }
 0x21e   : > { %v721_v52 = vpop.f32.mrf.mxu0 }
 0x21f   : > { %v722_v53 = vadd.f32 %v721_v52, %v559_v47  ;;  %1205 = vmatprep.mubr.msk.f32.mxu0 %vm528_vm1, %v725_v51  ;;  %v1151_v52 = vld [vmem:[%s516_s1] ss:$0 sm:$0xff] }
 0x220   : > { %v1196_v54 = vpop.f32.mrf.mxu0 }
 0x221   : > { %v726_v55 = vmax.f32 %v722_v53, 0.0 }
 0x223   : > { %1206 = vmatmul.mubr.msk.f32.vlgmr.msra.gmra.mxu0 %vm528_vm1, %v726_v55 }
 0x2e3   : > { %v1207_v9 = vpop.f32.mrf.mxu0 }
 0x2e4   : > { %v816_v10 = vadd.f32 %v1207_v9, %v1144_v8 }
 0x2e5   : > { %v810_v11 = vpop.f32.mrf.mxu0 }
 0x2e6   : > { %v1148_v12 = vmul.f32 -1.442695, %v816_v10  ;;  %v811_v13 = vadd.f32 %v1144_v8, %v810_v11 }
 0x2e8   : > { %1266 = vpow2.f32 %v1148_v12  ;;  %v1147_v14 = vmul.f32 -1.442695, %v811_v13 }
 0x2ea   : > { %1268 = vpow2.f32 %v1147_v14 }
 0x2f5   : > { %v1267_v15 = vpop.eup %1266 }
 0x2f6   : > { %v826_v16 = vadd.f32 1.0, %v1267_v15 }
 0x2f7   : > { %v1269_v17 = vpop.eup %1268 }
 0x2f8   : > { %v825_v18 = vadd.f32 1.0, %v1269_v17  ;;  %1270 = vrcp.f32 %v826_v16 }
 0x2fa   : > { %1272 = vrcp.f32 %v825_v18 }
 0x305   : > { %v1271_v19 = vpop.eup %1270 }
 0x306   : > { %v832_v22 = vmul.f32 %v1271_v19, %v816_v10 }
 0x307   : > { %v1273_v20 = vpop.eup %1272 }
 0x308   : > { %v831_v21 = vmul.f32 %v1273_v20, %v811_v13 }
 0x30a   : > { %1240 = vmatprep.mubr.f32.mxu1 %v831_v21 }
 0x30b   : > { %1241 = vmatmul.mubr.f32.vlgmr.msra.gmra.mxu1 %v832_v22 }
 0x3cb   : > { %v1242_v24 = vpop.f32.mrf.mxu1 }
 0x3cc   : > { %v928_v25 = vadd.f32 %v1242_v24, %v1149_v23 }
 0x3cd   : > { %v922_v26 = vpop.f32.mrf.mxu1 }
 0x3ce   : > { %v923_v27 = vadd.f32 %v1149_v23, %v922_v26  ;;  %v932_v28 = vadd.f32 %v928_v25, %v1461_v42 }
 0x3d0   : > { %v936_v29 = vsel %vm528_vm1, %v932_v28, 0.0  ;;  %v931_v30 = vadd.f32 %v923_v27, %v1457_v37 }
 0x3d1   : > { %937 = vadd.xlane.f32.xlu1 %v936_v29 }
 0x3d2   : > { %v933_v31 = vsel %vm528_vm1, %v931_v30, 0.0 }
 0x3d3   : > { %934 = vadd.xlane.f32.xlu0 %v933_v31 }
 0x45a   : > { %v938_v32 = vpop.xlane.xlu1 %937 }
 0x45b   : > { %v940_v33 = vmul.f32 0.03125, %v938_v32 }
 0x45c   : > { %v935_v34 = vpop.xlane.xlu0 %934 }
 0x45d   : > { %v942_v35 = vsub.f32 %v932_v28, %v940_v33  ;;  %v939_v36 = vmul.f32 0.03125, %v935_v34 }
 0x45f   : > { %v941_v38 = vsub.f32 %v931_v30, %v939_v36  ;;  %v944_v39 = vmul.f32 %v942_v35, %v942_v35 }
 0x461   : > { %v948_v40 = vsel %vm528_vm1, %v944_v39, 0.0  ;;  %v943_v41 = vmul.f32 %v941_v38, %v941_v38 }
 0x462   : > { %949 = vadd.xlane.f32.xlu1 %v948_v40 }
 0x463   : > { %v945_v42 = vsel %vm528_vm1, %v943_v41, 0.0 }
 0x464   : > { %946 = vadd.xlane.f32.xlu0 %v945_v42 }
 0x4eb   : > { %v950_v37 = vpop.xlane.xlu1 %949 }
 0x4ec   : > { %v952_v43 = vmul.f32 0.03125, %v950_v37 }
 0x4ed   : > { %v947_v44 = vpop.xlane.xlu0 %946 }
 0x4ee   : > { %v954_v45 = vadd.f32 1e-05, %v952_v43  ;;  %v951_v46 = vmul.f32 0.03125, %v947_v44 }
 0x4f0   : > { %1274 = vrsqrt.f32 %v954_v45  ;;  %v953_v47 = vadd.f32 1e-05, %v951_v46 }
 0x4f2   : > { %1276 = vrsqrt.f32 %v953_v47 }
 0x4fd   : > { %v1275_v48 = vpop.eup %1274 }
 0x4fe   : > { %v958_v50 = vmul.f32 %v1275_v48, %v942_v35 }
 0x4ff   : > { %v1277_v51 = vpop.eup %1276 }
 0x500   : > { %v967_v53 = vmul.f32 %v1150_v49, %v958_v50  ;;  %v957_v54 = vmul.f32 %v1277_v51, %v941_v38 }
 0x502   : > { %v976_v55 = vadd.f32 %v1151_v52, %v967_v53  ;;  %v966_v56 = vmul.f32 %v1150_v49, %v957_v54  ;;  %982 = sbr.rel (%p1152_p5) target bundleno = 1288 (0x508), region = 72 }
 0x504   : > { %978 = vst.msk [vmem:[#allocation2 + $0x8] sm:$0xff] %vm528_vm1, %v976_v55  ;;  %v975_v57 = vadd.f32 %v1151_v52, %v966_v56 }
 0x506   : > { %977 = vst.msk [vmem:[#allocation2] sm:$0xff] %vm528_vm1, %v975_v57 }
 0x507   : > { %983 = vst.msk [vmem:[#allocation3] sm:$0xff] %vm528_vm1, %v975_v57  ;;  %984 = vst.msk [vmem:[#allocation3 + $0x8] sm:$0xff] %vm528_vm1, %v976_v55 }
 0x508 PF: > { %p1247_p6 = scmp.eq.s32.totalorder %s1385_s18, 2  ;;  %s1316_s19 = smov [#allocation3]  }
 0x509   : > { %s991_s29 = sshll.u32 %s1316_s19, 4  ;;  %s992_s29 = int_to_ptr.vmem [resolvable:$true] %s991_s29 }
 0x50a   : > { %s1278_s12 = scalar_lea.vmem %s992_s29, 256  ;;  %p1285_p10 = scmp.lt.s32.totalorder %s992_s29, %s992_s29 }
 0x50b   : > { %p1279_p7 = scmp.ne.s32.totalorder %s992_s29, %s1278_s12  ;;  %p1286_p11 = scmp.lt.s32.totalorder %s1278_s12, %s1278_s12 }
 0x50d   : > { %p1280_p8 = pnand %p1279_p7, %p1247_p6  ;;  %p1287_p12 = por %p1286_p11, %p1285_p10 }
 0x50f   : > { %p1281_p9 = pneg %p1280_p8 }
 0x511   : > { %p1288_p13 = pnand %p1287_p12, %p1281_p9 }
 0x513   : > { %1291 = shalt.err (!%p1288_p13)
}
 0x514   : > { %s1317_s21 = smov 128   ;;  %s1318_s13 = smov 8  }
 0x515   : > { %1244 = dma.vmem_to_hbm [thread:$0]  (%p1247_p6), %s992_s29, 256, %s1545_s11, [#allocation4], %s1317_s21, %s1317_s21, %s1318_s13  }
 0x516   : > { %1307 = dma.done.wait (%p1247_p6), [#allocation4], 256  }
 0x517   : > { %1309 = vsyncadd (%p1247_p6), [#allocation4], 4294967040 }
 0x518 PF: > { %s1555_s1 = sld [smem:[#allocation6_spill]] }
 0x51e   : > { %s22_s17 = sadd.s32 1, %s1555_s1  }
 0x51f   : > { %p19_p0 = scmp.ge.s32.totalorder %s22_s17, 5  }
 0x521   :  { %21 = sbr.rel (!%p19_p0) target bundleno = 5 (0x5), region = 126 }
 0x526   :  { %1007 = vsyncpa [#allocation4], 1 }
 0x527   :  { %1009 = vsyncpa [#allocation4 + $0x1], 1 }

</bundles_post_ra>
